<compile_context>
chip_gen: v5e
topology: v5e:2x2
jax: 0.10.0
libtpu: 0.0.40
codegen_flags: <defaults>
</compile_context>

<pallas_src>
import functools

import jax
import jax.numpy as jnp
from jax import lax
from jax.experimental import pallas as pl
from jax.experimental.pallas import tpu as pltpu


def _round_up(x, m):
    return ((x + m - 1) // m) * m


# -----------------------------------------------------------------------------
# Path A: scalar-prefetch row gather (kernel body is a straight copy).
# -----------------------------------------------------------------------------
def _gather_kernel(idx_ref, row_ref, out_ref):
    del idx_ref  # consumed by the BlockSpec index_maps only
    out_ref[...] = row_ref[...]


def _embed_gather(idx, table):
    B = idx.shape[0]
    V, H = table.shape
    itemsize = jnp.dtype(table.dtype).itemsize
    cost = pl.CostEstimate(
        flops=B * H,  # effectively a copy
        transcendentals=0,
        bytes_accessed=2 * B * H * itemsize + B * 4,
    )
    return pl.pallas_call(
        _gather_kernel,
        out_shape=jax.ShapeDtypeStruct((B, H), table.dtype),
        grid_spec=pltpu.PrefetchScalarGridSpec(
            num_scalar_prefetch=1,
            grid=(B,),
            in_specs=[
                # Data-dependent row fetch: block index comes from the SMEM
                # prefetched, CFG-merged index array.
                pl.BlockSpec((1, H), lambda i, idx_ref: (idx_ref[i], 0)),
            ],
            out_specs=pl.BlockSpec((1, H), lambda i, idx_ref: (i, 0)),
        ),
        compiler_params=pltpu.CompilerParams(
            dimension_semantics=("arbitrary",),
        ),
        cost_estimate=cost,
    )(idx, table)


# -----------------------------------------------------------------------------
# Path B: VMEM-resident table + one-hot MXU matmul (large batch / small vocab).
# -----------------------------------------------------------------------------
def _onehot_matmul_kernel(idx_ref, table_ref, out_ref):
    tb = out_ref.shape[0]
    v_pad = table_ref.shape[0]
    lbl = idx_ref[...]                                        # (tb, 1) int32
    cols = lax.broadcasted_iota(jnp.int32, (tb, v_pad), 1)
    onehot = (cols == lbl).astype(table_ref.dtype)            # (tb, v_pad)
    out_ref[...] = jnp.dot(
        onehot, table_ref[...], preferred_element_type=jnp.float32
    ).astype(out_ref.dtype)


_MATMUL_VMEM_BUDGET = 24 * 1024 * 1024   # footprint cap for the resident-table path
_MATMUL_VMEM_LIMIT = 32 * 1024 * 1024    # explicit scoped-VMEM limit (v5e default is 16 MiB)
_STEP_BYTES_EQUIV = 350_000              # ~0.35 us/grid-step overhead @ ~1 TB/s HBM


def _matmul_plan(B, V, H, itemsize):
    """Largest tile_b whose resident-table footprint fits the VMEM budget,
    or None if even tile_b=8 does not fit (table too big -> must use gather)."""
    v_pad = _round_up(V, 256)            # MXU-friendly K on v6e/v7x (also a mult. of 128 for v5e)
    tile_b = min(_round_up(B, 8), 512)
    while True:
        vmem = (2 * v_pad * H * itemsize      # table (worst-case double-buffered)
                + tile_b * v_pad * itemsize   # one-hot selector
                + 2 * tile_b * H * itemsize   # output (double-buffered)
                + tile_b * H * 4              # f32 matmul result
                + 4 * tile_b * 4)             # merged index
        if vmem <= _MATMUL_VMEM_BUDGET:
            return tile_b, v_pad
        if tile_b <= 8:
            return None
        tile_b = _round_up(tile_b // 2, 8)


def _pick_path(B, V, H, itemsize):
    """Byte-equivalent cost model: per-step overhead counted as ~350 KB."""
    plan = _matmul_plan(B, V, H, itemsize)
    gather_cost = B * _STEP_BYTES_EQUIV + 2 * B * H * itemsize
    if plan is None:
        return "gather", None
    tile_b, v_pad = plan
    n_steps = _round_up(B, tile_b) // tile_b
    matmul_cost = (n_steps * _STEP_BYTES_EQUIV
                   + v_pad * H * itemsize + B * H * itemsize)
    if matmul_cost < gather_cost:
        return "matmul", plan
    return "gather", None


def _embed_onehot_matmul(idx, table, tile_b, v_pad):
    B = idx.shape[0]
    V, H = table.shape
    itemsize = jnp.dtype(table.dtype).itemsize

    # Zero-padded vocab rows are never selected (idx is clipped to < V).
    table_p = table if v_pad == V else jnp.pad(table, ((0, v_pad - V), (0, 0)))
    B_pad = _round_up(B, tile_b)
    idx_p = idx if B_pad == B else jnp.pad(idx, (0, B_pad - B))
    idx_2d = idx_p.reshape(B_pad, 1)

    cost = pl.CostEstimate(
        flops=B_pad * H,  # useful work ~ a copy of B rows (not the one-hot flops)
        transcendentals=0,
        bytes_accessed=v_pad * H * itemsize + B_pad * H * itemsize + B_pad * 4,
    )

    out = pl.pallas_call(
        _onehot_matmul_kernel,
        out_shape=jax.ShapeDtypeStruct((B_pad, H), table.dtype),
        grid_spec=pltpu.PrefetchScalarGridSpec(
            num_scalar_prefetch=0,
            grid=(B_pad // tile_b,),
            in_specs=[
                pl.BlockSpec((tile_b, 1), lambda i: (i, 0)),   # merged index
                # Full table, constant block index -> fetched once, reused
                # across every grid step.
                pl.BlockSpec((v_pad, H), lambda i: (0, 0)),
            ],
            out_specs=pl.BlockSpec((tile_b, H), lambda i: (i, 0)),
        ),
        compiler_params=pltpu.CompilerParams(
            dimension_semantics=("arbitrary",),
            vmem_limit_bytes=_MATMUL_VMEM_LIMIT,
        ),
        cost_estimate=cost,
    )(idx_2d, table_p)
    return out[:B]


# -----------------------------------------------------------------------------
# Public wrapper.
# -----------------------------------------------------------------------------
@functools.partial(jax.jit, static_argnames=("num_classes", "path"))
def label_embed_pallas(labels, drop_ids, table, num_classes, path="auto"):
    """out[b] = table[ where(drop_ids[b]==1, num_classes, labels[b]) ]."""
    B = labels.shape[0]
    V, H = table.shape
    itemsize = jnp.dtype(table.dtype).itemsize

    # Fold the CFG replacement into the wrapper: single merged index stream.
    idx = jnp.where(drop_ids.astype(jnp.int32) == 1, num_classes,
                    labels.astype(jnp.int32))
    # Guard out-of-range indices (PyTorch's nn.Embedding would raise instead;
    # this also covers dropout_prob == 0 + force_drop_ids, where the CFG row
    # does not exist).
    idx = jnp.clip(idx, 0, V - 1)

    if path == "auto":
        chosen, plan = _pick_path(B, V, H, itemsize)
    elif path == "matmul":
        plan = _matmul_plan(B, V, H, itemsize)
        chosen = "matmul" if plan is not None else "gather"
    else:
        chosen, plan = "gather", None

    if chosen == "gather":
        return _embed_gather(idx, table)
    tile_b, v_pad = plan
    return _embed_onehot_matmul(idx, table, tile_b, v_pad)


class LabelEmbedder:
    """JAX/Pallas port of the PyTorch LabelEmbedder (forward pass)."""

    def __init__(self, num_classes, hidden_size, dropout_prob, key,
                 dtype=jnp.float32):
        use_cfg_embedding = int(dropout_prob > 0)
        # nn.Embedding default init ~ N(0, 1); deterministic synthetic params.
        # Use bf16 here if the surrounding model runs bf16 (halves table bytes).
        self.embedding_table = jax.random.normal(
            key, (num_classes + use_cfg_embedding, hidden_size), dtype=dtype
        )
        self.num_classes = num_classes
        self.dropout_prob = dropout_prob

    def _drop_ids(self, labels, force_drop_ids, rng):
        if force_drop_ids is None:
            drop = jax.random.uniform(rng, (labels.shape[0],)) < self.dropout_prob
            # TODO(synk): torch.distributed.broadcast of drop_ids (rank 0 -> all)
            # is omitted; single-device execution here.
        else:
            drop = force_drop_ids == 1
        return drop.astype(jnp.int32)

    def __call__(self, labels, train, force_drop_ids=None, rng=None):
        labels = labels.astype(jnp.int32)
        use_dropout = self.dropout_prob > 0
        if (train and use_dropout) or (force_drop_ids is not None):
            drop_ids = self._drop_ids(labels, force_drop_ids, rng)
        else:
            drop_ids = jnp.zeros((labels.shape[0],), dtype=jnp.int32)
        return label_embed_pallas(
            labels, drop_ids, self.embedding_table, self.num_classes
        )


if __name__ == "__main__":
    num_classes = 16
    hidden_size = 128
    dropout_prob = 0.1
    batch = 8

    root = jax.random.PRNGKey(0)
    k_table, k_labels, k_drop = jax.random.split(root, 3)

    embedder = LabelEmbedder(num_classes, hidden_size, dropout_prob, k_table)
    labels = jax.random.randint(k_labels, (batch,), 0, num_classes, dtype=jnp.int32)

    # Training path (random token drop), explicit force_drop_ids path, eval path.
    out_train = embedder(labels, train=True, rng=k_drop)
    force = jnp.array([1, 0, 1, 0, 0, 0, 0, 1], dtype=jnp.int32)
    out_forced = embedder(labels, train=False, force_drop_ids=force)
    out_eval = embedder(labels, train=False)

    # Exercise BOTH kernel paths explicitly (auto picks matmul at this tiny vocab).
    zeros = jnp.zeros((batch,), dtype=jnp.int32)
    out_gather = label_embed_pallas(labels, zeros, embedder.embedding_table,
                                    num_classes, path="gather")
    out_matmul = label_embed_pallas(labels, zeros, embedder.embedding_table,
                                    num_classes, path="matmul")

    jax.block_until_ready((out_train, out_forced, out_eval, out_gather, out_matmul))

    # Correctness checks against plain-JAX reference.
    table = embedder.embedding_table
    ref_eval = table[labels]
    assert out_eval.shape == (batch, hidden_size)
    assert jnp.allclose(out_eval, ref_eval)
    assert jnp.allclose(out_gather, ref_eval)
    assert jnp.allclose(out_matmul, ref_eval)

    ref_forced = table[jnp.where(force == 1, num_classes, labels)]
    assert jnp.allclose(out_forced, ref_forced)
    assert out_train.shape == (batch, hidden_size)

    print("KERNEL_OK")
</pallas_src>

<mosaic_0001>
module attributes {stable_mosaic.version = 11 : i64} {
  func.func @_onehot_matmul_kernel(%arg0: i32, %arg1: memref<8x1xi32, #tpu.memory_space<vmem>>, %arg2: memref<256x128xf32, #tpu.memory_space<vmem>>, %arg3: memref<8x128xf32, #tpu.memory_space<vmem>>) attributes {dimension_semantics = [#tpu.dimension_semantics<arbitrary>], iteration_bounds = array<i64: 1>, scalar_prefetch = 0 : i64, scratch_operands = 0 : i64, tpu.core_type = #tpu.core_type<tc>, window_params = [{transform_indices = @transform_0, window_bounds = array<i64: 8, 1>}, {pipeline_mode = #tpu.pipeline_mode<synchronous>, transform_indices = @transform_1, window_bounds = array<i64: 256, 128>}, {transform_indices = @transform_2, window_bounds = array<i64: 8, 128>}]} {
    %c0 = arith.constant 0 : index
    %c0_0 = arith.constant 0 : index
    %0 = vector.load %arg1[%c0, %c0_0] : memref<8x1xi32, #tpu.memory_space<vmem>>, vector<8x1xi32>
    %1 = tpu.iota {dimensions = array<i32: 1>} : vector<8x256xi32>
    %2 = vector.broadcast %0 : vector<8x1xi32> to vector<8x256xi32>
    %3 = arith.cmpi eq, %1, %2 : vector<8x256xi32>
    %4 = arith.extui %3 : vector<8x256xi1> to vector<8x256xi32>
    %5 = arith.sitofp %4 : vector<8x256xi32> to vector<8x256xf32>
    %c0_1 = arith.constant 0 : index
    %c0_2 = arith.constant 0 : index
    %6 = vector.load %arg2[%c0_1, %c0_2] : memref<256x128xf32, #tpu.memory_space<vmem>>, vector<256x128xf32>
    %cst = arith.constant dense<0.000000e+00> : vector<8x128xf32>
    %7 = tpu.matmul %5, %6, %cst {dimension_numbers = #tpu.dot_dimension_numbers<[1], [0], [0], [1], [0, 0, 1, 1], [], []>} : vector<8x256xf32>, vector<256x128xf32>, vector<8x128xf32> -> vector<8x128xf32>
    %c0_3 = arith.constant 0 : index
    %c0_4 = arith.constant 0 : index
    %8 = vector.load %arg3[%c0_3, %c0_4] : memref<8x128xf32, #tpu.memory_space<vmem>>, vector<8x128xf32>
    tpu.vector_store %arg3[%c0_3, %c0_4], %7 {strides = array<i32>} : memref<8x128xf32, #tpu.memory_space<vmem>>, vector<8x128xf32>,
    return
  }
  func.func @transform_0(%arg0: i32) -> (i32, i32) {
    %c0_i32 = arith.constant 0 : i32
    %c0_i32_0 = arith.constant 0 : i32
    return %arg0, %c0_i32 : i32, i32
  }
  func.func @transform_1(%arg0: i32) -> (i32, i32) {
    %c0_i32 = arith.constant 0 : i32
    %c0_i32_0 = arith.constant 0 : i32
    %c0_i32_1 = arith.constant 0 : i32
    return %c0_i32, %c0_i32_0 : i32, i32
  }
  func.func @transform_2(%arg0: i32) -> (i32, i32) {
    %c0_i32 = arith.constant 0 : i32
    %c0_i32_0 = arith.constant 0 : i32
    return %arg0, %c0_i32 : i32, i32
  }
}

</mosaic_0001>

<bundles_post_ra>
// kernel: label_embed_pallas.1
= control target key start
LH: loop header
LB: loop body
LE: loop exit
PB: predicated region body
PF: predicated region fallthrough
CT: control target
= control target key end

     0   :  { %v148_v3 = vmov 0   ;;  %s268_s0 = inlined_call_operand.vmem [shape: s32[8,1], index: 0, kind: input, shape index: {}]   ;;  %s269_s1 = inlined_call_operand.vmem [shape: f32[256,128], index: 1, kind: input, shape index: {}]   ;;  %s270_s2 = inlined_call_operand.hbm [shape: f32[8,128], index: 2, kind: output, shape index: {}]  }
   0x1   :  { %v12_v0 = vld [vmem:[%s268_s0] sm:$0xff]  ;;  %v40_v1 = vld [vmem:[%s269_s1 + $0x78] sm:$0xff]  ;;  %121 = vset.pattern.permute.xlu0 %v148_v3  ;;  %v39_v4 = vld [vmem:[%s269_s1 + $0x70] sm:$0xff] }
   0x2   :  { %v56_v2 = vld [vmem:[%s269_s1 + $0xf8] sm:$0xff]  ;;  %57 = vmatpush.msra.mxu0 %v40_v1  ;;  %v55_v5 = vld [vmem:[%s269_s1 + $0xf0] sm:$0xff]  ;;  %17 = vperm.xlu0 %121, %v12_v0   ;;  %v38_v6 = vld [vmem:[%s269_s1 + $0x68] sm:$0xff] }
   0x3   :  { %77 = vmatpush.msra.mxu1 %v56_v2  ;;  %v54_v7 = vld [vmem:[%s269_s1 + $0xe8] sm:$0xff]  ;;  %v37_v8 = vld [vmem:[%s269_s1 + $0x60] sm:$0xff]  ;;  %v36_v10 = vld [vmem:[%s269_s1 + $0x58] sm:$0xff] }
   0x4   :  { %58 = vmatpush.msra.mxu0 %v39_v4  ;;  %v53_v9 = vld [vmem:[%s269_s1 + $0xe0] sm:$0xff]  ;;  %v52_v11 = vld [vmem:[%s269_s1 + $0xd8] sm:$0xff]  ;;  %v35_v12 = vld [vmem:[%s269_s1 + $0x50] sm:$0xff] }
   0x5   :  { %78 = vmatpush.msra.mxu1 %v55_v5  ;;  %v51_v13 = vld [vmem:[%s269_s1 + $0xd0] sm:$0xff]  ;;  %v34_v14 = vld [vmem:[%s269_s1 + $0x48] sm:$0xff] }
   0x6   :  { %59 = vmatpush.msra.mxu0 %v38_v6 }
   0x7   :  { %79 = vmatpush.msra.mxu1 %v54_v7 }
   0x8   :  { %60 = vmatpush.msra.mxu0 %v37_v8 }
   0x9   :  { %80 = vmatpush.msra.mxu1 %v53_v9 }
   0xa   :  { %61 = vmatpush.msra.mxu0 %v36_v10 }
   0xb   :  { %81 = vmatpush.msra.mxu1 %v52_v11 }
   0xc   :  { %7 = vsyncpa [#allocation3], 0  ;;  %62 = vmatpush.msra.mxu0 %v35_v12  ;;  %v50_v15 = vld [vmem:[%s269_s1 + $0xc8] sm:$0xff]  ;;  %v33_v16 = vld [vmem:[%s269_s1 + $0x40] sm:$0xff]  ;;  %v13_v34 = vlaneseq  ;;  %v149_v38 = vmov 1.0   ;;  %s150_s17 = smov [#allocation2]  }
   0xd   :  { %82 = vmatpush.msra.mxu1 %v51_v13  ;;  %v49_v17 = vld [vmem:[%s269_s1 + $0xc0] sm:$0xff]  ;;  %v32_v18 = vld [vmem:[%s269_s1 + $0x38] sm:$0xff]  ;;  %v31_v20 = vld [vmem:[%s269_s1 + $0x30] sm:$0xff]  ;;  %s103_s18 = sshll.u32 %s150_s17, 4  ;;  %s105_s20 = sshll.u32 %s270_s2, 4  ;;  %s104_s18 = int_to_ptr.vmem [resolvable:$true] %s103_s18  ;;  %s106_s20 = int_to_ptr.hbm [resolvable:$true] %s105_s20 }
   0xe   :  { %63 = vmatpush.msra.mxu0 %v34_v14  ;;  %v48_v19 = vld [vmem:[%s269_s1 + $0xb8] sm:$0xff]  ;;  %v47_v21 = vld [vmem:[%s269_s1 + $0xb0] sm:$0xff]  ;;  %v30_v22 = vld [vmem:[%s269_s1 + $0x28] sm:$0xff]  ;;  %v14_v35 = vand.u32 127, %v13_v34 }
   0xf   :  { %83 = vmatpush.msra.mxu1 %v50_v15  ;;  %v46_v23 = vld [vmem:[%s269_s1 + $0xa8] sm:$0xff]  ;;  %v29_v24 = vld [vmem:[%s269_s1 + $0x20] sm:$0xff]  ;;  %v28_v26 = vld [vmem:[%s269_s1 + $0x18] sm:$0xff] }
  0x10   :  { %64 = vmatpush.msra.mxu0 %v33_v16  ;;  %v45_v25 = vld [vmem:[%s269_s1 + $0xa0] sm:$0xff]  ;;  %v44_v27 = vld [vmem:[%s269_s1 + $0x98] sm:$0xff]  ;;  %v27_v28 = vld [vmem:[%s269_s1 + $0x10] sm:$0xff]  ;;  %v15_v36 = vadd.s32 128, %v14_v35 }
  0x11   :  { %84 = vmatpush.msra.mxu1 %v49_v17  ;;  %v43_v29 = vld [vmem:[%s269_s1 + $0x90] sm:$0xff]  ;;  %v26_v30 = vld [vmem:[%s269_s1 + $0x8] sm:$0xff]  ;;  %v25_v32 = vld [vmem:[%s269_s1] sm:$0xff] }
  0x12   :  { %65 = vmatpush.msra.mxu0 %v32_v18  ;;  %v42_v31 = vld [vmem:[%s269_s1 + $0x88] sm:$0xff]  ;;  %v41_v33 = vld [vmem:[%s269_s1 + $0x80] sm:$0xff] }
  0x13   :  { %85 = vmatpush.msra.mxu1 %v48_v19 }
  0x14   :  { %66 = vmatpush.msra.mxu0 %v31_v20 }
  0x15   :  { %86 = vmatpush.msra.mxu1 %v47_v21 }
  0x16   :  { %67 = vmatpush.msra.mxu0 %v30_v22 }
  0x17   :  { %87 = vmatpush.msra.mxu1 %v46_v23 }
  0x18   :  { %68 = vmatpush.msra.mxu0 %v29_v24 }
  0x19   :  { %88 = vmatpush.msra.mxu1 %v45_v25 }
  0x1a   :  { %69 = vmatpush.msra.mxu0 %v28_v26 }
  0x1b   :  { %89 = vmatpush.msra.mxu1 %v44_v27 }
  0x1c   :  { %70 = vmatpush.msra.mxu0 %v27_v28 }
  0x1d   :  { %90 = vmatpush.msra.mxu1 %v43_v29 }
  0x1e   :  { %71 = vmatpush.msra.mxu0 %v26_v30 }
  0x1f   :  { %91 = vmatpush.msra.mxu1 %v42_v31 }
  0x20   :  { %72 = vmatpush.msra.mxu0 %v25_v32 }
  0x21   :  { %92 = vmatpush.msra.mxu1 %v41_v33 }
  0x74   :  { %v18_v37 = vpop.permute.xlu0 %17 }
  0x75   :  { %vm19_vm0 = vcmp.eq.s32.totalorder %v14_v35, %v18_v37  ;;  %vm20_vm1 = vcmp.eq.s32.totalorder %v15_v36, %v18_v37 }
  0x76   :  { %116 = vmatmul.msk.f32.vlgmr.msra.gmra.mxu0 %vm19_vm0, %v149_v38  ;;  %117 = vmatmul.msk.f32.vlgmr.msra.gmra.mxu1 %vm20_vm1, %v149_v38 }
  0xf3   :  { %v74_v39 = vpop.f32.mrf.mxu0  ;;  %v94_v40 = vpop.f32.mrf.mxu1 }
  0xf4   :  { %v95_v41 = vadd.f32 %v94_v40, %v74_v39 }
  0xf6   :  { %97 = vst [vmem:[#allocation2] sm:$0xff] %v95_v41 }
  0xf7   :  { %108 = dma.vmem_to_hbm [thread:$0]  %s104_s18, 128, %s106_s20, [#allocation3]  }
  0xf8   :  { %146 = dma.done.wait [#allocation3], 128  }
  0xf9   :  { %147 = vsyncadd [#allocation3], 4294967168 }
  0xfa   :  { %113 = vsyncpa [#allocation3], 1 }

</bundles_post_ra>
